<compile_context>
chip_gen: v7x
topology: tpu7x:2x2x1
jax: 0.10.0
libtpu: 0.0.40
codegen_flags: <defaults>
</compile_context>

<pallas_src>
import jax
import jax.numpy as jnp
from jax.experimental import pallas as pl
from jax.experimental.pallas import tpu as pltpu

EPS = 1e-5


def fused_residual_block_kernel(x_ref, w1_ref, g1_ref, b1_ref,
                                w2_ref, g2_ref, b2_ref, o_ref):
    """Fused conv1+bn1+relu+conv2+bn2+residual+relu, NCW layout, all in vregs."""
    N, C, L = x_ref.shape

    xv = x_ref[...]          # single load of the input; reused for the residual
    w1 = w1_ref[...]         # (K, Co, Ci, 1) f32
    w2 = w2_ref[...]

    zcol = jnp.zeros((N, C, 1), jnp.float32)
    inv_nl = 1.0 / float(N * L)

    def conv_same(v, wk):
        # K=3 "same" conv.  Taps are lane shifts of v with zero edge columns;
        # channel mixing is VPU broadcast multiplies + an XLU sublane reduce.
        left = jnp.concatenate([zcol, v[:, :, :L - 1]], axis=2)    # x[l-1]
        right = jnp.concatenate([v[:, :, 1:], zcol], axis=2)       # x[l+1]

        def mix(tap, k):
            # (N,1,Ci,L) * (Co,Ci,1) -> (N,Co,Ci,L); reduce Ci (sublanes).
            return jnp.sum(tap[:, None, :, :] * wk[k], axis=2)

        return mix(left, 0) + mix(v, 1) + mix(right, 2)

    def batch_norm(v, g, b):
        # Two-pass batch statistics over (N, L) per channel, f32 throughout.
        mean = jnp.sum(v, axis=(0, 2), keepdims=True) * inv_nl
        cent = v - mean
        var = jnp.sum(cent * cent, axis=(0, 2), keepdims=True) * inv_nl
        return cent * jax.lax.rsqrt(var + EPS) * g + b

    # Stage 1: conv1 + bn1 + relu (h never leaves registers).
    h = jnp.maximum(batch_norm(conv_same(xv, w1), g1_ref[...], b1_ref[...]), 0.0)
    # Stage 2: conv2 + bn2 + residual + relu.
    y = batch_norm(conv_same(h, w2), g2_ref[...], b2_ref[...]) + xv
    o_ref[...] = jnp.maximum(y, 0.0).astype(o_ref.dtype)


def residual_block(x, w1, g1, b1, w2, g2, b2):
    """x: (N, C, L) float32 (PyTorch NCW); w*: (C, C, K); g*/b*: (C,).
    Returns (N, C, L) float32 -- no activation-layout transposes anywhere."""
    N, C, L = x.shape
    K = w1.shape[-1]

    # One-time parameter prep (tiny tensors, not on the activation path):
    # (Co, Ci, K) -> (K, Co, Ci, 1) so tap k broadcasts directly against the
    # (N, 1, Ci, L) tap values inside the kernel.
    wb1 = jnp.transpose(w1, (2, 0, 1)).astype(jnp.float32)[..., None]
    wb2 = jnp.transpose(w2, (2, 0, 1)).astype(jnp.float32)[..., None]
    g1r = g1.astype(jnp.float32).reshape(1, C, 1)
    b1r = b1.astype(jnp.float32).reshape(1, C, 1)
    g2r = g2.astype(jnp.float32).reshape(1, C, 1)
    b2r = b2.astype(jnp.float32).reshape(1, C, 1)

    vmem = pl.BlockSpec(memory_space=pltpu.MemorySpace.VMEM)

    return pl.pallas_call(
        fused_residual_block_kernel,
        out_shape=jax.ShapeDtypeStruct((N, C, L), jnp.float32),
        in_specs=[vmem] * 7,
        out_specs=vmem,
    )(x.astype(jnp.float32), wb1, g1r, b1r, wb2, g2r, b2r)


def _reference(x, w1, g1, b1, w2, g2, b2):
    """Pure-JAX reference with identical semantics (NCW in/out)."""
    def conv1d(inp, w):  # inp: (N, C, L), w: (Co, Ci, K)
        K = w.shape[-1]
        pad = K // 2
        xp = jnp.pad(inp, ((0, 0), (0, 0), (pad, pad)))
        L = inp.shape[-1]
        out = jnp.zeros_like(inp)
        for t in range(K):
            out = out + jnp.einsum("ncl,dc->ndl", xp[:, :, t:t + L], w[:, :, t])
        return out

    def bn(inp, g, b):
        mean = jnp.mean(inp, axis=(0, 2), keepdims=True)
        var = jnp.mean(jnp.square(inp - mean), axis=(0, 2), keepdims=True)
        return (inp - mean) * jax.lax.rsqrt(var + EPS) * g[None, :, None] + b[None, :, None]

    h = jax.nn.relu(bn(conv1d(x, w1), g1, b1))
    return jax.nn.relu(bn(conv1d(h, w2), g2, b2) + x)


if __name__ == "__main__":
    N, C, L, K = 2, 4, 16, 3

    key = jax.random.PRNGKey(0)
    k_x, k_w1, k_w2 = jax.random.split(key, 3)

    x = jax.random.normal(k_x, (N, C, L), dtype=jnp.float32)

    # Conv1d default init: U(-1/sqrt(C_in*K), 1/sqrt(C_in*K)), no bias.
    bound = 1.0 / (C * K) ** 0.5
    w1 = jax.random.uniform(k_w1, (C, C, K), jnp.float32, -bound, bound)
    w2 = jax.random.uniform(k_w2, (C, C, K), jnp.float32, -bound, bound)
    # BatchNorm1d default init: weight=1, bias=0.
    g1, b1 = jnp.ones((C,), jnp.float32), jnp.zeros((C,), jnp.float32)
    g2, b2 = jnp.ones((C,), jnp.float32), jnp.zeros((C,), jnp.float32)

    out = residual_block(x, w1, g1, b1, w2, g2, b2)
    out = jax.block_until_ready(out)

    ref = _reference(x, w1, g1, b1, w2, g2, b2)
    assert out.shape == (N, C, L)
    assert jnp.allclose(out, ref, atol=1e-4, rtol=1e-4), "mismatch vs reference"

    print("KERNEL_OK")
</pallas_src>

<mosaic_0001>
module attributes {stable_mosaic.version = 11 : i64} {
  func.func @fused_residual_block_kernel(%arg0: memref<2x4x16xf32, #tpu.memory_space<vmem>>, %arg1: memref<3x4x4x1xf32, #tpu.memory_space<vmem>>, %arg2: memref<1x4x1xf32, #tpu.memory_space<vmem>>, %arg3: memref<1x4x1xf32, #tpu.memory_space<vmem>>, %arg4: memref<3x4x4x1xf32, #tpu.memory_space<vmem>>, %arg5: memref<1x4x1xf32, #tpu.memory_space<vmem>>, %arg6: memref<1x4x1xf32, #tpu.memory_space<vmem>>, %arg7: memref<2x4x16xf32, #tpu.memory_space<vmem>>) attributes {dimension_semantics = [], scalar_prefetch = 0 : i64, scratch_operands = 0 : i64, tpu.core_type = #tpu.core_type<tc>} {
    %c0 = arith.constant 0 : index
    %c0_0 = arith.constant 0 : index
    %c0_1 = arith.constant 0 : index
    %0 = vector.load %arg0[%c0, %c0_0, %c0_1] : memref<2x4x16xf32, #tpu.memory_space<vmem>>, vector<2x4x16xf32>
    %c0_2 = arith.constant 0 : index
    %c0_3 = arith.constant 0 : index
    %c0_4 = arith.constant 0 : index
    %c0_5 = arith.constant 0 : index
    %1 = vector.load %arg1[%c0_2, %c0_3, %c0_4, %c0_5] : memref<3x4x4x1xf32, #tpu.memory_space<vmem>>, vector<3x4x4x1xf32>
    %c0_6 = arith.constant 0 : index
    %c0_7 = arith.constant 0 : index
    %c0_8 = arith.constant 0 : index
    %c0_9 = arith.constant 0 : index
    %2 = vector.load %arg4[%c0_6, %c0_7, %c0_8, %c0_9] : memref<3x4x4x1xf32, #tpu.memory_space<vmem>>, vector<3x4x4x1xf32>
    %cst = arith.constant 0.000000e+00 : f32
    %3 = vector.broadcast %cst : f32 to vector<2x4x1xf32>
    %4 = vector.extract_strided_slice %0 {offsets = [0, 0, 0], sizes = [2, 4, 15], strides = [1, 1, 1]} : vector<2x4x16xf32> to vector<2x4x15xf32>
    %5 = tpu.concatenate %3, %4 in 2 : vector<2x4x1xf32>, vector<2x4x15xf32> -> vector<2x4x16xf32>
    %6 = vector.extract_strided_slice %0 {offsets = [0, 0, 1], sizes = [2, 4, 15], strides = [1, 1, 1]} : vector<2x4x16xf32> to vector<2x4x15xf32>
    %7 = tpu.concatenate %6, %3 in 2 : vector<2x4x15xf32>, vector<2x4x1xf32> -> vector<2x4x16xf32>
    %8 = vector.shape_cast %5 : vector<2x4x16xf32> to vector<2x1x4x16xf32>
    %9 = vector.extract_strided_slice %1 {offsets = [0, 0, 0, 0], sizes = [1, 4, 4, 1], strides = [1, 1, 1, 1]} : vector<3x4x4x1xf32> to vector<1x4x4x1xf32>
    %10 = vector.shape_cast %9 : vector<1x4x4x1xf32> to vector<4x4x1xf32>
    %11 = vector.shape_cast %10 : vector<4x4x1xf32> to vector<1x4x4x1xf32>
    %12 = vector.broadcast %8 : vector<2x1x4x16xf32> to vector<2x4x4x16xf32>
    %13 = vector.broadcast %11 : vector<1x4x4x1xf32> to vector<2x4x4x16xf32>
    %14 = arith.mulf %12, %13 : vector<2x4x4x16xf32>
    %cst_10 = arith.constant dense<0.000000e+00> : vector<2x4x16xf32>
    %15 = vector.multi_reduction <add>, %14, %cst_10 [2] : vector<2x4x4x16xf32> to vector<2x4x16xf32>
    %16 = vector.shape_cast %0 : vector<2x4x16xf32> to vector<2x1x4x16xf32>
    %17 = vector.extract_strided_slice %1 {offsets = [1, 0, 0, 0], sizes = [1, 4, 4, 1], strides = [1, 1, 1, 1]} : vector<3x4x4x1xf32> to vector<1x4x4x1xf32>
    %18 = vector.shape_cast %17 : vector<1x4x4x1xf32> to vector<4x4x1xf32>
    %19 = vector.shape_cast %18 : vector<4x4x1xf32> to vector<1x4x4x1xf32>
    %20 = vector.broadcast %16 : vector<2x1x4x16xf32> to vector<2x4x4x16xf32>
    %21 = vector.broadcast %19 : vector<1x4x4x1xf32> to vector<2x4x4x16xf32>
    %22 = arith.mulf %20, %21 : vector<2x4x4x16xf32>
    %cst_11 = arith.constant dense<0.000000e+00> : vector<2x4x16xf32>
    %23 = vector.multi_reduction <add>, %22, %cst_11 [2] : vector<2x4x4x16xf32> to vector<2x4x16xf32>
    %24 = arith.addf %15, %23 : vector<2x4x16xf32>
    %25 = vector.shape_cast %7 : vector<2x4x16xf32> to vector<2x1x4x16xf32>
    %26 = vector.extract_strided_slice %1 {offsets = [2, 0, 0, 0], sizes = [1, 4, 4, 1], strides = [1, 1, 1, 1]} : vector<3x4x4x1xf32> to vector<1x4x4x1xf32>
    %27 = vector.shape_cast %26 : vector<1x4x4x1xf32> to vector<4x4x1xf32>
    %28 = vector.shape_cast %27 : vector<4x4x1xf32> to vector<1x4x4x1xf32>
    %29 = vector.broadcast %25 : vector<2x1x4x16xf32> to vector<2x4x4x16xf32>
    %30 = vector.broadcast %28 : vector<1x4x4x1xf32> to vector<2x4x4x16xf32>
    %31 = arith.mulf %29, %30 : vector<2x4x4x16xf32>
    %cst_12 = arith.constant dense<0.000000e+00> : vector<2x4x16xf32>
    %32 = vector.multi_reduction <add>, %31, %cst_12 [2] : vector<2x4x4x16xf32> to vector<2x4x16xf32>
    %33 = arith.addf %24, %32 : vector<2x4x16xf32>
    %c0_13 = arith.constant 0 : index
    %c0_14 = arith.constant 0 : index
    %c0_15 = arith.constant 0 : index
    %34 = vector.load %arg2[%c0_13, %c0_14, %c0_15] : memref<1x4x1xf32, #tpu.memory_space<vmem>>, vector<1x4x1xf32>
    %c0_16 = arith.constant 0 : index
    %c0_17 = arith.constant 0 : index
    %c0_18 = arith.constant 0 : index
    %35 = vector.load %arg3[%c0_16, %c0_17, %c0_18] : memref<1x4x1xf32, #tpu.memory_space<vmem>>, vector<1x4x1xf32>
    %cst_19 = arith.constant dense<0.000000e+00> : vector<4xf32>
    %36 = vector.multi_reduction <add>, %33, %cst_19 [0, 2] : vector<2x4x16xf32> to vector<4xf32>
    %37 = vector.shape_cast %36 : vector<4xf32> to vector<1x4x1xf32>
    %cst_20 = arith.constant 3.125000e-02 : f32
    %38 = vector.broadcast %cst_20 : f32 to vector<1x4x1xf32>
    %39 = arith.mulf %37, %38 : vector<1x4x1xf32>
    %40 = vector.broadcast %39 : vector<1x4x1xf32> to vector<2x4x16xf32>
    %41 = arith.subf %33, %40 : vector<2x4x16xf32>
    %42 = arith.mulf %41, %41 : vector<2x4x16xf32>
    %cst_21 = arith.constant dense<0.000000e+00> : vector<4xf32>
    %43 = vector.multi_reduction <add>, %42, %cst_21 [0, 2] : vector<2x4x16xf32> to vector<4xf32>
    %44 = vector.shape_cast %43 : vector<4xf32> to vector<1x4x1xf32>
    %cst_22 = arith.constant 3.125000e-02 : f32
    %45 = vector.broadcast %cst_22 : f32 to vector<1x4x1xf32>
    %46 = arith.mulf %44, %45 : vector<1x4x1xf32>
    %cst_23 = arith.constant 9.99999974E-6 : f32
    %47 = vector.broadcast %cst_23 : f32 to vector<1x4x1xf32>
    %48 = arith.addf %46, %47 : vector<1x4x1xf32>
    %49 = math.rsqrt %48 : vector<1x4x1xf32>
    %50 = vector.broadcast %49 : vector<1x4x1xf32> to vector<2x4x16xf32>
    %51 = arith.mulf %41, %50 : vector<2x4x16xf32>
    %52 = vector.broadcast %34 : vector<1x4x1xf32> to vector<2x4x16xf32>
    %53 = arith.mulf %51, %52 : vector<2x4x16xf32>
    %54 = vector.broadcast %35 : vector<1x4x1xf32> to vector<2x4x16xf32>
    %55 = arith.addf %53, %54 : vector<2x4x16xf32>
    %cst_24 = arith.constant 0.000000e+00 : f32
    %56 = vector.broadcast %cst_24 : f32 to vector<2x4x16xf32>
    %57 = arith.maximumf %55, %56 : vector<2x4x16xf32>
    %58 = vector.extract_strided_slice %57 {offsets = [0, 0, 0], sizes = [2, 4, 15], strides = [1, 1, 1]} : vector<2x4x16xf32> to vector<2x4x15xf32>
    %59 = tpu.concatenate %3, %58 in 2 : vector<2x4x1xf32>, vector<2x4x15xf32> -> vector<2x4x16xf32>
    %60 = vector.extract_strided_slice %57 {offsets = [0, 0, 1], sizes = [2, 4, 15], strides = [1, 1, 1]} : vector<2x4x16xf32> to vector<2x4x15xf32>
    %61 = tpu.concatenate %60, %3 in 2 : vector<2x4x15xf32>, vector<2x4x1xf32> -> vector<2x4x16xf32>
    %62 = vector.shape_cast %59 : vector<2x4x16xf32> to vector<2x1x4x16xf32>
    %63 = vector.extract_strided_slice %2 {offsets = [0, 0, 0, 0], sizes = [1, 4, 4, 1], strides = [1, 1, 1, 1]} : vector<3x4x4x1xf32> to vector<1x4x4x1xf32>
    %64 = vector.shape_cast %63 : vector<1x4x4x1xf32> to vector<4x4x1xf32>
    %65 = vector.shape_cast %64 : vector<4x4x1xf32> to vector<1x4x4x1xf32>
    %66 = vector.broadcast %62 : vector<2x1x4x16xf32> to vector<2x4x4x16xf32>
    %67 = vector.broadcast %65 : vector<1x4x4x1xf32> to vector<2x4x4x16xf32>
    %68 = arith.mulf %66, %67 : vector<2x4x4x16xf32>
    %cst_25 = arith.constant dense<0.000000e+00> : vector<2x4x16xf32>
    %69 = vector.multi_reduction <add>, %68, %cst_25 [2] : vector<2x4x4x16xf32> to vector<2x4x16xf32>
    %70 = vector.shape_cast %57 : vector<2x4x16xf32> to vector<2x1x4x16xf32>
    %71 = vector.extract_strided_slice %2 {offsets = [1, 0, 0, 0], sizes = [1, 4, 4, 1], strides = [1, 1, 1, 1]} : vector<3x4x4x1xf32> to vector<1x4x4x1xf32>
    %72 = vector.shape_cast %71 : vector<1x4x4x1xf32> to vector<4x4x1xf32>
    %73 = vector.shape_cast %72 : vector<4x4x1xf32> to vector<1x4x4x1xf32>
    %74 = vector.broadcast %70 : vector<2x1x4x16xf32> to vector<2x4x4x16xf32>
    %75 = vector.broadcast %73 : vector<1x4x4x1xf32> to vector<2x4x4x16xf32>
    %76 = arith.mulf %74, %75 : vector<2x4x4x16xf32>
    %cst_26 = arith.constant dense<0.000000e+00> : vector<2x4x16xf32>
    %77 = vector.multi_reduction <add>, %76, %cst_26 [2] : vector<2x4x4x16xf32> to vector<2x4x16xf32>
    %78 = arith.addf %69, %77 : vector<2x4x16xf32>
    %79 = vector.shape_cast %61 : vector<2x4x16xf32> to vector<2x1x4x16xf32>
    %80 = vector.extract_strided_slice %2 {offsets = [2, 0, 0, 0], sizes = [1, 4, 4, 1], strides = [1, 1, 1, 1]} : vector<3x4x4x1xf32> to vector<1x4x4x1xf32>
    %81 = vector.shape_cast %80 : vector<1x4x4x1xf32> to vector<4x4x1xf32>
    %82 = vector.shape_cast %81 : vector<4x4x1xf32> to vector<1x4x4x1xf32>
    %83 = vector.broadcast %79 : vector<2x1x4x16xf32> to vector<2x4x4x16xf32>
    %84 = vector.broadcast %82 : vector<1x4x4x1xf32> to vector<2x4x4x16xf32>
    %85 = arith.mulf %83, %84 : vector<2x4x4x16xf32>
    %cst_27 = arith.constant dense<0.000000e+00> : vector<2x4x16xf32>
    %86 = vector.multi_reduction <add>, %85, %cst_27 [2] : vector<2x4x4x16xf32> to vector<2x4x16xf32>
    %87 = arith.addf %78, %86 : vector<2x4x16xf32>
    %c0_28 = arith.constant 0 : index
    %c0_29 = arith.constant 0 : index
    %c0_30 = arith.constant 0 : index
    %88 = vector.load %arg5[%c0_28, %c0_29, %c0_30] : memref<1x4x1xf32, #tpu.memory_space<vmem>>, vector<1x4x1xf32>
    %c0_31 = arith.constant 0 : index
    %c0_32 = arith.constant 0 : index
    %c0_33 = arith.constant 0 : index
    %89 = vector.load %arg6[%c0_31, %c0_32, %c0_33] : memref<1x4x1xf32, #tpu.memory_space<vmem>>, vector<1x4x1xf32>
    %cst_34 = arith.constant dense<0.000000e+00> : vector<4xf32>
    %90 = vector.multi_reduction <add>, %87, %cst_34 [0, 2] : vector<2x4x16xf32> to vector<4xf32>
    %91 = vector.shape_cast %90 : vector<4xf32> to vector<1x4x1xf32>
    %cst_35 = arith.constant 3.125000e-02 : f32
    %92 = vector.broadcast %cst_35 : f32 to vector<1x4x1xf32>
    %93 = arith.mulf %91, %92 : vector<1x4x1xf32>
    %94 = vector.broadcast %93 : vector<1x4x1xf32> to vector<2x4x16xf32>
    %95 = arith.subf %87, %94 : vector<2x4x16xf32>
    %96 = arith.mulf %95, %95 : vector<2x4x16xf32>
    %cst_36 = arith.constant dense<0.000000e+00> : vector<4xf32>
    %97 = vector.multi_reduction <add>, %96, %cst_36 [0, 2] : vector<2x4x16xf32> to vector<4xf32>
    %98 = vector.shape_cast %97 : vector<4xf32> to vector<1x4x1xf32>
    %cst_37 = arith.constant 3.125000e-02 : f32
    %99 = vector.broadcast %cst_37 : f32 to vector<1x4x1xf32>
    %100 = arith.mulf %98, %99 : vector<1x4x1xf32>
    %cst_38 = arith.constant 9.99999974E-6 : f32
    %101 = vector.broadcast %cst_38 : f32 to vector<1x4x1xf32>
    %102 = arith.addf %100, %101 : vector<1x4x1xf32>
    %103 = math.rsqrt %102 : vector<1x4x1xf32>
    %104 = vector.broadcast %103 : vector<1x4x1xf32> to vector<2x4x16xf32>
    %105 = arith.mulf %95, %104 : vector<2x4x16xf32>
    %106 = vector.broadcast %88 : vector<1x4x1xf32> to vector<2x4x16xf32>
    %107 = arith.mulf %105, %106 : vector<2x4x16xf32>
    %108 = vector.broadcast %89 : vector<1x4x1xf32> to vector<2x4x16xf32>
    %109 = arith.addf %107, %108 : vector<2x4x16xf32>
    %110 = arith.addf %109, %0 : vector<2x4x16xf32>
    %cst_39 = arith.constant 0.000000e+00 : f32
    %111 = vector.broadcast %cst_39 : f32 to vector<2x4x16xf32>
    %112 = arith.maximumf %110, %111 : vector<2x4x16xf32>
    %c0_40 = arith.constant 0 : index
    %c0_41 = arith.constant 0 : index
    %c0_42 = arith.constant 0 : index
    %113 = vector.load %arg7[%c0_40, %c0_41, %c0_42] : memref<2x4x16xf32, #tpu.memory_space<vmem>>, vector<2x4x16xf32>
    tpu.vector_store %arg7[%c0_40, %c0_41, %c0_42], %112 {strides = array<i32>} : memref<2x4x16xf32, #tpu.memory_space<vmem>>, vector<2x4x16xf32>,
    return
  }
}

</mosaic_0001>

<bundles_post_ra>
// kernel: tpu_custom_call.1
= control target key start
LH: loop header
LB: loop body
LE: loop exit
PB: predicated region body
PF: predicated region fallthrough
CT: control target
= control target key end

     0   :  { %v1171_v2 = vmov 0   ;;  %s1753_s0 = inlined_call_operand.vmem [shape: f32[2,4,16], index: 0, kind: input, shape index: {}]   ;;  %s1754_s1 = inlined_call_operand.vmem [shape: f32[3,4,4,1], index: 1, kind: input, shape index: {}]   ;;  %s1755_s2 = inlined_call_operand.vmem [shape: f32[1,4,1], index: 2, kind: input, shape index: {}]   ;;  %s1756_s3 = inlined_call_operand.vmem [shape: f32[1,4,1], index: 3, kind: input, shape index: {}]   ;;  %s1757_s4 = inlined_call_operand.vmem [shape: f32[3,4,4,1], index: 4, kind: input, shape index: {}]   ;;  %s1758_s5 = inlined_call_operand.vmem [shape: f32[1,4,1], index: 5, kind: input, shape index: {}]   ;;  %s1759_s6 = inlined_call_operand.vmem [shape: f32[1,4,1], index: 6, kind: input, shape index: {}]   ;;  %s1760_s7 = inlined_call_operand.hbm [shape: f32[2,4,16], index: 7, kind: output, shape index: {}]  }
   0x1   :  { %v33_v0 = vld [vmem:[%s1754_s1 + $0x10] sm:$0xf]  ;;  %v29_v1 = vld [vmem:[%s1754_s1] sm:$0xf]  ;;  %1140 = vset.pattern.permute.xlu1 %v1171_v2  ;;  %1139 = vset.pattern.permute.xlu0 %v1171_v2  ;;  %v34_v3 = vld [vmem:[%s1754_s1 + $0x14] sm:$0xf] }
   0x2   :  { %160 = vperm.xlu1 %1140, %v33_v0   ;;  %75 = vperm.xlu0 %1139, %v29_v1   ;;  %v30_v4 = vld [vmem:[%s1754_s1 + $0x4] sm:$0xf] }
   0x3   :  { %12 = vsyncpa [#allocation3], 0  ;;  %v35_v5 = vld [vmem:[%s1754_s1 + $0x18] sm:$0xf]  ;;  %v31_v6 = vld [vmem:[%s1754_s1 + $0x8] sm:$0xf] }
   0x4   :  { %v36_v7 = vld [vmem:[%s1754_s1 + $0x1c] sm:$0xf]  ;;  %v32_v8 = vld [vmem:[%s1754_s1 + $0xc] sm:$0xf]  ;;  %v38_v9 = vld [vmem:[%s1754_s1 + $0x24] sm:$0xf] }
   0x5   :  { %v37_v10 = vld [vmem:[%s1754_s1 + $0x20] sm:$0xf]  ;;  %v40_v11 = vld [vmem:[%s1754_s1 + $0x2c] sm:$0xf]  ;;  %v39_v12 = vld [vmem:[%s1754_s1 + $0x28] sm:$0xf] }
   0x6   :  { %165 = vperm.xlu1 %1140, %v34_v3   ;;  %80 = vperm.xlu0 %1139, %v30_v4   ;;  %v28_v13 = vld [vmem:[%s1753_s0 + $0x4] sm:$0xf]  ;;  %v27_v14 = vld [vmem:[%s1753_s0] sm:$0xf]  ;;  %s1172_s29 = smov 1   ;;  %s1173_s30 = smov 127  }
   0x7   :  { %vm101_vm0 = vcmask 125952   ;;  %vm61_vm1 = vcmask 7168   ;;  %vm70_vm2 = vcmask 121856   ;;  %vm352_vm3 = vcmask 1041409  }
   0x8   :  { %vm354_vm4 = vcmask 1042434   ;;  %vm356_vm5 = vcmask 1043459  }
   0xa   :  { %170 = vperm.xlu1 %1140, %v35_v5   ;;  %85 = vperm.xlu0 %1139, %v31_v6  }
   0xe   :  { %175 = vperm.xlu1 %1140, %v36_v7   ;;  %90 = vperm.xlu0 %1139, %v32_v8  }
  0x12   :  { %257 = vperm.xlu1 %1140, %v38_v9   ;;  %252 = vperm.xlu0 %1139, %v37_v10  }
  0x16   :  { %267 = vperm.xlu1 %1140, %v40_v11   ;;  %262 = vperm.xlu0 %1139, %v39_v12  }
  0x1a   :  { %57 = vrot.lane.b32.xlu1 %v28_v13, %s1172_s29  ;;  %55 = vrot.lane.b32.xlu0 %v27_v14, %s1172_s29 }
  0x1e   :  { %66 = vrot.lane.b32.xlu1 %v28_v13, %s1173_s30  ;;  %64 = vrot.lane.b32.xlu0 %v27_v14, %s1173_s30 }
  0x81   :  { %v161_v15 = vpop.permute.xlu1 %160  ;;  %v1263_v16 = vpop.permute.xlu0 %75 }
  0x82   :  { %v178_v17 = vmul.f32 %v161_v15, %v27_v14  ;;  %v182_v18 = vmul.f32 %v161_v15, %v28_v13 }
  0x84   :  { %v186_v19 = vsel %vm101_vm0, %v178_v17, 0.0  ;;  %v214_v20 = vsel %vm101_vm0, %v182_v18, 0.0 }
  0x85   :  { %v187_v21 = vrot.slane %v186_v19, 4  ;;  %v215_v22 = vrot.slane %v214_v20, 4  ;;  %v166_v23 = vpop.permute.xlu1 %165  ;;  %v1267_v24 = vpop.permute.xlu0 %80 }
  0x86   :  { %v179_v25 = vmul.f32 %v166_v23, %v27_v14  ;;  %v183_v26 = vmul.f32 %v166_v23, %v28_v13 }
  0x87   :  { %v188_v27 = vadd.f32 %v187_v21, %v186_v19  ;;  %v216_v28 = vadd.f32 %v215_v22, %v214_v20 }
  0x88   :  { %v193_v29 = vsel %vm101_vm0, %v179_v25, 0.0  ;;  %v221_v30 = vsel %vm101_vm0, %v183_v26, 0.0 }
  0x89   :  { %v194_v31 = vrot.slane %v193_v29, 4  ;;  %v222_v32 = vrot.slane %v221_v30, 4  ;;  %v171_v33 = vpop.permute.xlu1 %170  ;;  %v1271_v34 = vpop.permute.xlu0 %85  ;;  %v189_v37 = vrot.slane %v188_v27, 2  ;;  %v217_v38 = vrot.slane %v216_v28, 2 }
  0x8a   :  { %v180_v35 = vmul.f32 %v171_v33, %v27_v14  ;;  %v184_v36 = vmul.f32 %v171_v33, %v28_v13 }
  0x8b   :  { %v195_v39 = vadd.f32 %v194_v31, %v193_v29  ;;  %v223_v40 = vadd.f32 %v222_v32, %v221_v30  ;;  %v190_v51 = vadd.f32 %v189_v37, %v188_v27  ;;  %v218_v52 = vadd.f32 %v217_v38, %v216_v28 }
  0x8c   :  { %v200_v41 = vsel %vm101_vm0, %v180_v35, 0.0  ;;  %v228_v42 = vsel %vm101_vm0, %v184_v36, 0.0 }
  0x8d   :  { %v196_v43 = vrot.slane %v195_v39, 2  ;;  %v224_v44 = vrot.slane %v223_v40, 2  ;;  %v176_v45 = vpop.permute.xlu1 %175  ;;  %v91_v46 = vpop.permute.xlu0 %90  ;;  %v201_v47 = vrot.slane %v200_v41, 4  ;;  %v229_v48 = vrot.slane %v228_v42, 4 }
  0x8e   :  { %v181_v49 = vmul.f32 %v176_v45, %v27_v14  ;;  %v185_v50 = vmul.f32 %v176_v45, %v28_v13  ;;  %v191_v3 = vrot.slane %v190_v51, 1  ;;  %v219_v4 = vrot.slane %v218_v52, 1 }
  0x8f   :  { %v202_v53 = vadd.f32 %v201_v47, %v200_v41  ;;  %v230_v54 = vadd.f32 %v229_v48, %v228_v42  ;;  %v197_v57 = vadd.f32 %v196_v43, %v195_v39  ;;  %v225_v58 = vadd.f32 %v224_v44, %v223_v40 }
  0x90   :  { %v207_v55 = vsel %vm101_vm0, %v181_v49, 0.0  ;;  %v235_v56 = vsel %vm101_vm0, %v185_v50, 0.0  ;;  %v1289_v18 = vadd.f32 %v191_v3, %v190_v51  ;;  %v1291_v19 = vadd.f32 %v219_v4, %v218_v52 }
  0x91   :  { %v208_v59 = vrot.slane %v207_v55, 4  ;;  %v236_v60 = vrot.slane %v235_v56, 4  ;;  %v1277_v61 = vpop.permute.xlu1 %257  ;;  %v1279_v62 = vpop.permute.xlu0 %252  ;;  %v203_v63 = vrot.slane %v202_v53, 2  ;;  %v231_v0 = vrot.slane %v230_v54, 2 }
  0x92   :  { %v198_v7 = vrot.slane %v197_v57, 1  ;;  %v226_v8 = vrot.slane %v225_v58, 1 }
  0x93   :  { %v209_v1 = vadd.f32 %v208_v59, %v207_v55  ;;  %v237_v2 = vadd.f32 %v236_v60, %v235_v56  ;;  %v204_v5 = vadd.f32 %v203_v63, %v202_v53  ;;  %v232_v6 = vadd.f32 %v231_v0, %v230_v54 }
  0x94   :  { %v1293_v20 = vadd.f32 %v198_v7, %v197_v57  ;;  %v1295_v21 = vadd.f32 %v226_v8, %v225_v58 }
  0x95   :  { %v210_v9 = vrot.slane %v209_v1, 2  ;;  %v238_v10 = vrot.slane %v237_v2, 2  ;;  %v1281_v11 = vpop.permute.xlu1 %267  ;;  %v1283_v12 = vpop.permute.xlu0 %262  ;;  %v205_v13 = vrot.slane %v204_v5, 1  ;;  %v233_v14 = vrot.slane %v232_v6, 1 }
  0x97   :  { %v1285_v15 = vadd.f32 %v210_v9, %v209_v1  ;;  %v1287_v17 = vadd.f32 %v238_v10, %v237_v2  ;;  %v1297_v25 = vadd.f32 %v205_v13, %v204_v5  ;;  %v1299_v26 = vadd.f32 %v233_v14, %v232_v6 }
  0x99   :  { %v58_v22 = vpop.permute.xlu1 %57  ;;  %v56_v23 = vpop.permute.xlu0 %55  ;;  %v212_v29 = vrot.slane %v1285_v15, 1  ;;  %v240_v30 = vrot.slane %v1287_v17, 1 }
  0x9a   :  { %v63_v27 = vsel %vm61_vm1, 0.0, %v58_v22  ;;  %v62_v28 = vsel %vm61_vm1, 0.0, %v56_v23 }
  0x9b   :  { %v97_v31 = vmul.f32 %v1263_v16, %v63_v27  ;;  %v98_v32 = vmul.f32 %v1267_v24, %v63_v27  ;;  %v99_v33 = vmul.f32 %v1271_v34, %v63_v27  ;;  %v100_v35 = vmul.f32 %v91_v46, %v63_v27 }
  0x9c   :  { %v93_v36 = vmul.f32 %v1263_v16, %v62_v28  ;;  %v94_v37 = vmul.f32 %v1267_v24, %v62_v28  ;;  %v95_v40 = vmul.f32 %v1271_v34, %v62_v28  ;;  %v96_v41 = vmul.f32 %v91_v46, %v62_v28 }
  0x9d   :  { %v130_v38 = vsel %vm101_vm0, %v97_v31, 0.0  ;;  %v137_v39 = vsel %vm101_vm0, %v98_v32, 0.0  ;;  %v144_v44 = vsel %vm101_vm0, %v99_v33, 0.0  ;;  %v151_v45 = vsel %vm101_vm0, %v100_v35, 0.0 }
  0x9e   :  { %v131_v42 = vrot.slane %v130_v38, 4  ;;  %v138_v43 = vrot.slane %v137_v39, 4  ;;  %v145_v47 = vrot.slane %v144_v44, 4  ;;  %v152_v48 = vrot.slane %v151_v45, 4 }
  0x9f   :  { %v102_v49 = vsel %vm101_vm0, %v93_v36, 0.0  ;;  %v109_v16 = vsel %vm101_vm0, %v94_v37, 0.0  ;;  %v116_v46 = vsel %vm101_vm0, %v95_v40, 0.0  ;;  %v123_v54 = vsel %vm101_vm0, %v96_v41, 0.0  ;;  %v67_v36 = vpop.permute.xlu1 %66  ;;  %v65_v37 = vpop.permute.xlu0 %64 }
  0xa0   :  { %v132_v24 = vadd.f32 %v131_v42, %v130_v38  ;;  %v139_v50 = vadd.f32 %v138_v43, %v137_v39  ;;  %v103_v51 = vrot.slane %v102_v49, 4  ;;  %v110_v52 = vrot.slane %v109_v16, 4 }
  0xa1   :  { %v146_v53 = vadd.f32 %v145_v47, %v144_v44  ;;  %v153_v34 = vadd.f32 %v152_v48, %v151_v45  ;;  %v117_v63 = vrot.slane %v116_v46, 4  ;;  %v124_v0 = vrot.slane %v123_v54, 4 }
  0xa2   :  { %v133_v55 = vrot.slane %v132_v24, 2  ;;  %v140_v56 = vrot.slane %v139_v50, 2  ;;  %v104_v57 = vadd.f32 %v103_v51, %v102_v49  ;;  %v111_v58 = vadd.f32 %v110_v52, %v109_v16 }
  0xa3   :  { %v147_v59 = vrot.slane %v146_v53, 2  ;;  %v154_v60 = vrot.slane %v153_v34, 2  ;;  %v118_v7 = vadd.f32 %v117_v63, %v116_v46  ;;  %v125_v8 = vadd.f32 %v124_v0, %v123_v54 }
  0xa4   :  { %v134_v1 = vadd.f32 %v133_v55, %v132_v24  ;;  %v141_v2 = vadd.f32 %v140_v56, %v139_v50  ;;  %v105_v3 = vrot.slane %v104_v57, 2  ;;  %v112_v4 = vrot.slane %v111_v58, 2 }
  0xa5   :  { %v148_v5 = vadd.f32 %v147_v59, %v146_v53  ;;  %v155_v6 = vadd.f32 %v154_v60, %v153_v34  ;;  %v119_v27 = vrot.slane %v118_v7, 2  ;;  %v126_v28 = vrot.slane %v125_v8, 2 }
  0xa6   :  { %v135_v9 = vrot.slane %v134_v1, 1  ;;  %v142_v10 = vrot.slane %v141_v2, 1  ;;  %v106_v13 = vadd.f32 %v105_v3, %v104_v57  ;;  %v113_v14 = vadd.f32 %v112_v4, %v111_v58 }
  0xa7   :  { %v149_v22 = vrot.slane %v148_v5, 1  ;;  %v156_v23 = vrot.slane %v155_v6, 1  ;;  %v1320_v38 = vadd.f32 %v212_v29, %v1285_v15  ;;  %v1323_v39 = vadd.f32 %v240_v30, %v1287_v17 }
  0xa8   :  { %v136_v31 = vadd.f32 %v135_v9, %v134_v1  ;;  %v143_v32 = vadd.f32 %v142_v10, %v141_v2  ;;  %v107_v33 = vrot.slane %v106_v13, 1  ;;  %v114_v35 = vrot.slane %v113_v14, 1 }
  0xa9   :  { %v1325_v40 = vadd.f32 %v119_v27, %v118_v7  ;;  %v1327_v41 = vadd.f32 %v126_v28, %v125_v8  ;;  %v1329_v42 = vadd.f32 %v149_v22, %v148_v5  ;;  %v1331_v43 = vadd.f32 %v156_v23, %v155_v6 }
  0xaa   :  { %v108_v44 = vadd.f32 %v107_v33, %v106_v13  ;;  %v115_v45 = vadd.f32 %v114_v35, %v113_v14  ;;  %v1334_v47 = vadd.f32 %v1291_v19, %v136_v31  ;;  %v1337_v48 = vadd.f32 %v1295_v21, %v143_v32 }
  0xab   :  { %v72_v15 = vsel %vm70_vm2, %v67_v36, 0.0  ;;  %v71_v17 = vsel %vm70_vm2, %v65_v37, 0.0  ;;  %v121_v29 = vrot.slane %v1325_v40, 1  ;;  %v128_v30 = vrot.slane %v1327_v41, 1 }
  0xac   :  { %v274_v49 = vmul.f32 %v1279_v62, %v72_v15  ;;  %v275_v16 = vmul.f32 %v1277_v61, %v72_v15  ;;  %v1346_v24 = vadd.f32 %v1289_v18, %v108_v44  ;;  %v1349_v19 = vadd.f32 %v1293_v20, %v115_v45 }
  0xad   :  { %v276_v21 = vmul.f32 %v1283_v12, %v72_v15  ;;  %v277_v50 = vmul.f32 %v1281_v11, %v72_v15  ;;  %v270_v53 = vmul.f32 %v1279_v62, %v71_v17  ;;  %v271_v34 = vmul.f32 %v1277_v61, %v71_v17 }
  0xae   :  { %v306_v51 = vsel %vm101_vm0, %v274_v49, 0.0  ;;  %v313_v52 = vsel %vm101_vm0, %v275_v16, 0.0  ;;  %v272_v57 = vmul.f32 %v1283_v12, %v71_v17  ;;  %v273_v58 = vmul.f32 %v1281_v11, %v71_v17 }
  0xaf   :  { %v307_v46 = vrot.slane %v306_v51, 4  ;;  %v314_v54 = vrot.slane %v313_v52, 4  ;;  %v320_v18 = vsel %vm101_vm0, %v276_v21, 0.0  ;;  %v327_v55 = vsel %vm101_vm0, %v277_v50, 0.0 }
  0xb0   :  { %v321_v20 = vrot.slane %v320_v18, 4  ;;  %v328_v56 = vrot.slane %v327_v55, 4  ;;  %v278_v63 = vsel %vm101_vm0, %v270_v53, 0.0  ;;  %v285_v62 = vsel %vm101_vm0, %v271_v34, 0.0 }
  0xb1   :  { %v308_v59 = vadd.f32 %v307_v46, %v306_v51  ;;  %v315_v60 = vadd.f32 %v314_v54, %v313_v52  ;;  %v279_v1 = vrot.slane %v278_v63, 4  ;;  %v286_v2 = vrot.slane %v285_v62, 4 }
  0xb2   :  { %v322_v0 = vadd.f32 %v321_v20, %v320_v18  ;;  %v329_v61 = vadd.f32 %v328_v56, %v327_v55  ;;  %v292_v5 = vsel %vm101_vm0, %v272_v57, 0.0  ;;  %v299_v6 = vsel %vm101_vm0, %v273_v58, 0.0 }
  0xb3   :  { %v309_v3 = vrot.slane %v308_v59, 2  ;;  %v316_v4 = vrot.slane %v315_v60, 2  ;;  %v280_v8 = vadd.f32 %v279_v1, %v278_v63  ;;  %v287_v11 = vadd.f32 %v286_v2, %v285_v62 }
  0xb4   :  { %v323_v7 = vrot.slane %v322_v0, 2  ;;  %v330_v12 = vrot.slane %v329_v61, 2  ;;  %v293_v13 = vrot.slane %v292_v5, 4  ;;  %v300_v14 = vrot.slane %v299_v6, 4 }
  0xb5   :  { %v310_v9 = vadd.f32 %v309_v3, %v308_v59  ;;  %v317_v10 = vadd.f32 %v316_v4, %v315_v60  ;;  %v281_v27 = vrot.slane %v280_v8, 2  ;;  %v288_v28 = vrot.slane %v287_v11, 2  ;;  %v46_v3 = vld [vmem:[%s1757_s4 + $0x14] sm:$0xf]  ;;  %v45_v4 = vld [vmem:[%s1757_s4 + $0x10] sm:$0xf] }
  0xb6   :  { %v324_v22 = vadd.f32 %v323_v7, %v322_v0  ;;  %v331_v23 = vadd.f32 %v330_v12, %v329_v61  ;;  %v294_v33 = vadd.f32 %v293_v13, %v292_v5  ;;  %v301_v35 = vadd.f32 %v300_v14, %v299_v6  ;;  %v42_v5 = vld [vmem:[%s1757_s4 + $0x4] sm:$0xf]  ;;  %v41_v6 = vld [vmem:[%s1757_s4] sm:$0xf] }
  0xb7   :  { %v311_v31 = vrot.slane %v310_v9, 1  ;;  %v318_v32 = vrot.slane %v317_v10, 1  ;;  %v282_v44 = vadd.f32 %v281_v27, %v280_v8  ;;  %v289_v45 = vadd.f32 %v288_v28, %v287_v11  ;;  %v50_v7 = vld [vmem:[%s1757_s4 + $0x24] sm:$0xf]  ;;  %v49_v12 = vld [vmem:[%s1757_s4 + $0x20] sm:$0xf] }
  0xb8   :  { %v325_v36 = vrot.slane %v324_v22, 1  ;;  %v332_v37 = vrot.slane %v331_v23, 1  ;;  %v295_v49 = vrot.slane %v294_v33, 2  ;;  %v302_v16 = vrot.slane %v301_v35, 2 }
  0xb9   :  { %v312_v15 = vadd.f32 %v311_v31, %v310_v9  ;;  %v319_v17 = vadd.f32 %v318_v32, %v317_v10  ;;  %v122_v21 = vadd.f32 %v121_v29, %v1325_v40  ;;  %v283_v51 = vrot.slane %v282_v44, 1 }
  0xba   :  { %v326_v50 = vadd.f32 %v325_v36, %v324_v22  ;;  %v290_v52 = vrot.slane %v289_v45, 1  ;;  %v129_v53 = vadd.f32 %v128_v30, %v1327_v41  ;;  %v296_v34 = vadd.f32 %v295_v49, %v294_v33 }
  0xbb   :  { %v303_v46 = vadd.f32 %v302_v16, %v301_v35  ;;  %v248_v54 = vadd.f32 %v1299_v26, %v1329_v42  ;;  %v284_v18 = vadd.f32 %v283_v51, %v282_v44  ;;  %v249_v20 = vadd.f32 %v1323_v39, %v1331_v43 }
  0xbc   :  { %v291_v55 = vadd.f32 %v290_v52, %v289_v45  ;;  %v333_v56 = vadd.f32 %v332_v37, %v331_v23  ;;  %v297_v57 = vrot.slane %v296_v34, 1  ;;  %v338_v40 = vadd.f32 %v312_v15, %v1334_v47 }
  0xbd   :  { %v304_v58 = vrot.slane %v303_v46, 1  ;;  %v339_v29 = vadd.f32 %v319_v17, %v1337_v48  ;;  %v244_v59 = vadd.f32 %v1297_v25, %v122_v21  ;;  %v334_v41 = vadd.f32 %v284_v18, %v1346_v24 }
  0xbe   :  { %v335_v30 = vadd.f32 %v291_v55, %v1349_v19  ;;  %v340_v60 = vadd.f32 %v326_v50, %v248_v54  ;;  %v298_v26 = vadd.f32 %v297_v57, %v296_v34  ;;  %v341_v63 = vadd.f32 %v333_v56, %v249_v20 }
  0xbf   :  { %v305_v42 = vadd.f32 %v304_v58, %v303_v46  ;;  %v358_v62 = vsel %vm352_vm3, %v339_v29, %v338_v40  ;;  %v245_v39 = vadd.f32 %v1320_v38, %v129_v53  ;;  %v342_v38 = vld [vmem:[%s1755_s2] sm:$0xf] }
  0xc0   :  { %v353_v43 = vsel %vm352_vm3, %v335_v30, %v334_v41  ;;  %v359_v47 = vsel %vm354_vm4, %v340_v60, %v358_v62  ;;  %v336_v0 = vadd.f32 %v298_v26, %v244_v59  ;;  %v48_v59 = vld [vmem:[%s1757_s4 + $0x1c] sm:$0xf]  ;;  %v52_v26 = vld [vmem:[%s1757_s4 + $0x2c] sm:$0xf] }
  0xc1   :  { %v360_v48 = vsel %vm356_vm5, %v341_v63, %v359_v47  ;;  %v337_v25 = vadd.f32 %v305_v42, %v245_v39 }
  0xc2   :  { %v355_v24 = vsel %vm354_vm4, %v336_v0, %v353_v43  ;;  %v364_v19 = vsel %vm101_vm0, %v360_v48, 0.0 }
  0xc3   :  { %v357_v61 = vsel %vm356_vm5, %v337_v25, %v355_v24 }
  0xc4   :  { %v363_v1 = vsel %vm101_vm0, %v357_v61, 0.0 }
  0xc5   :  { %v365_v2 = vadd.f32 %v364_v19, %v363_v1 }
  0xc7   :  { %366 = vadd.xlane.f32.xlu0 %v365_v2 }
  0xdd   :  { %441 = vperm.xlu0 %1139, %v342_v38  }
  0xe1   :  { %611 = vperm.xlu0 %1139, %v46_v3  }
  0xe5   :  { %607 = vperm.xlu0 %1139, %v45_v4  }
  0xe9   :  { %528 = vperm.xlu0 %1139, %v42_v5  }
  0xed   :  { %523 = vperm.xlu0 %1139, %v41_v6  }
  0xf1   :  { %840 = vperm.xlu0 %1139, %v50_v7  }
  0xf5   :  { %835 = vperm.xlu0 %1139, %v49_v12  }
 0x154   :  { %v367_v8 = vpop.xlane.xlu0 %366 }
 0x155   :  { %v368_v11 = vmul.f32 0.03125, %v367_v8 }
 0x157   :  { %v370_v9 = vrot.slane %v368_v11, 1  ;;  %v371_v10 = vrot.slane %v368_v11, 2  ;;  %v377_v13 = vsub.f32 %v334_v41, %v368_v11  ;;  %v372_v14 = vrot.slane %v368_v11, 3  ;;  %v43_v41 = vld [vmem:[%s1757_s4 + $0x8] sm:$0xf] }
 0x158   :  { %v381_v31 = vsub.f32 %v338_v40, %v368_v11  ;;  %v343_v40 = vld [vmem:[%s1756_s3] sm:$0xf] }
 0x159   :  { %v1406_v22 = vsub.f32 %v335_v30, %v370_v9  ;;  %v1408_v23 = vsub.f32 %v336_v0, %v371_v10  ;;  %v1410_v27 = vsub.f32 %v339_v29, %v370_v9  ;;  %v1412_v28 = vsub.f32 %v340_v60, %v371_v10  ;;  %v47_v29 = vld [vmem:[%s1757_s4 + $0x18] sm:$0xf]  ;;  %v44_v30 = vld [vmem:[%s1757_s4 + $0xc] sm:$0xf]  ;;  %v51_v60 = vld [vmem:[%s1757_s4 + $0x28] sm:$0xf] }
 0x15a   :  { %v380_v32 = vsub.f32 %v337_v25, %v372_v14  ;;  %v1414_v33 = vsub.f32 %v341_v63, %v372_v14  ;;  %v385_v15 = vmul.f32 %v377_v13, %v377_v13  ;;  %v389_v16 = vmul.f32 %v381_v31, %v381_v31 }
 0x15b   :  { %v386_v35 = vmul.f32 %v1406_v22, %v1406_v22  ;;  %v387_v36 = vmul.f32 %v1408_v23, %v1408_v23  ;;  %v390_v37 = vmul.f32 %v1410_v27, %v1410_v27  ;;  %v391_v44 = vmul.f32 %v1412_v28, %v1412_v28 }
 0x15c   :  { %v388_v45 = vmul.f32 %v380_v32, %v380_v32  ;;  %v392_v17 = vmul.f32 %v1414_v33, %v1414_v33  ;;  %v442_v39 = vpop.permute.xlu0 %441 }
 0x15d   :  { %v401_v49 = vrot.slane %v386_v35, 7  ;;  %v403_v21 = vrot.slane %v387_v36, 6  ;;  %v407_v50 = vrot.slane %v390_v37, 7  ;;  %v409_v51 = vrot.slane %v391_v44, 6 }
 0x15e   :  { %v405_v53 = vrot.slane %v388_v45, 5  ;;  %v411_v18 = vrot.slane %v392_v17, 5  ;;  %v443_v0 = vrot.slane %v442_v39, 1  ;;  %v444_v48 = vrot.slane %v442_v39, 2 }
 0x15f   :  { %v402_v52 = vsel %vm352_vm3, %v401_v49, %v385_v15  ;;  %v408_v46 = vsel %vm352_vm3, %v407_v50, %v389_v16  ;;  %v445_v25 = vrot.slane %v442_v39, 3 }
 0x160   :  { %v404_v34 = vsel %vm354_vm4, %v403_v21, %v402_v52  ;;  %v410_v55 = vsel %vm354_vm4, %v409_v51, %v408_v46  ;;  %v1455_v24 = vpop.permute.xlu0 %611 }
 0x161   :  { %v406_v54 = vsel %vm356_vm5, %v405_v53, %v404_v34  ;;  %v412_v56 = vsel %vm356_vm5, %v411_v18, %v410_v55  ;;  %v626_v21 = vrot.slane %v1455_v24, 3 }
 0x162   :  { %v415_v20 = vsel %vm101_vm0, %v406_v54, 0.0  ;;  %v416_v57 = vsel %vm101_vm0, %v412_v56, 0.0 }
 0x163   :  { %v417_v58 = vadd.f32 %v416_v57, %v415_v20 }
 0x165   :  { %418 = vadd.xlane.f32.xlu1 %v417_v58 }
 0x176   :  { %460 = vperm.xlu1 %1140, %v343_v40  }
 0x17a   :  { %615 = vperm.xlu1 %1140, %v47_v29  }
 0x17e   :  { %619 = vperm.xlu1 %1140, %v48_v59  }
 0x182   :  { %533 = vperm.xlu1 %1140, %v43_v41  }
 0x186   :  { %538 = vperm.xlu1 %1140, %v44_v30  }
 0x18a   :  { %845 = vperm.xlu1 %1140, %v51_v60  }
 0x18e   :  { %850 = vperm.xlu1 %1140, %v52_v26  }
 0x1f2   :  { %v419_v42 = vpop.xlane.xlu1 %418 }
 0x1f3   :  { %v420_v63 = vmul.f32 0.03125, %v419_v42 }
 0x1f5   :  { %v421_v62 = vadd.f32 1e-05, %v420_v63 }
 0x1f6   :  { %v461_v43 = vpop.permute.xlu1 %460 }
 0x1f7   :  { %1141 = vrsqrt.f32 %v421_v62  ;;  %v462_v3 = vrot.slane %v461_v43, 1  ;;  %v463_v4 = vrot.slane %v461_v43, 2  ;;  %v464_v5 = vrot.slane %v461_v43, 3 }
 0x1fa   :  { %v616_v35 = vpop.permute.xlu1 %615 }
 0x1fb   :  { %v627_v20 = vrot.slane %v616_v35, 1  ;;  %v628_v40 = vrot.slane %v616_v35, 2  ;;  %v629_v59 = vrot.slane %v616_v35, 3 }
 0x1fe   :  { %v620_v46 = vpop.permute.xlu1 %619 }
 0x1ff   :  { %v630_v41 = vrot.slane %v620_v46, 1  ;;  %v631_v30 = vrot.slane %v620_v46, 2  ;;  %v632_v63 = vrot.slane %v620_v46, 3 }
 0x201   :  { %v1142_v47 = vpop.eup %1141 }
 0x202   :  { %v424_v19 = vrot.slane %v1142_v47, 1  ;;  %v425_v61 = vrot.slane %v1142_v47, 2  ;;  %v426_v1 = vrot.slane %v1142_v47, 3  ;;  %v431_v2 = vmul.f32 %v1142_v47, %v377_v13 }
 0x203   :  { %v435_v38 = vmul.f32 %v1142_v47, %v381_v31 }
 0x204   :  { %v432_v6 = vmul.f32 %v424_v19, %v1406_v22  ;;  %v433_v7 = vmul.f32 %v425_v61, %v1408_v23  ;;  %v434_v12 = vmul.f32 %v426_v1, %v380_v32  ;;  %v436_v8 = vmul.f32 %v424_v19, %v1410_v27  ;;  %v608_v22 = vpop.permute.xlu0 %607 }
 0x205   :  { %v437_v11 = vmul.f32 %v425_v61, %v1412_v28  ;;  %v438_v9 = vmul.f32 %v426_v1, %v1414_v33  ;;  %v450_v10 = vmul.f32 %v442_v39, %v431_v2  ;;  %v454_v14 = vmul.f32 %v442_v39, %v435_v38 }
 0x206   :  { %v451_v36 = vmul.f32 %v443_v0, %v432_v6  ;;  %v452_v13 = vmul.f32 %v444_v48, %v433_v7  ;;  %v453_v31 = vmul.f32 %v445_v25, %v434_v12  ;;  %v455_v37 = vmul.f32 %v443_v0, %v436_v8 }
 0x207   :  { %v456_v44 = vmul.f32 %v444_v48, %v437_v11  ;;  %v457_v45 = vmul.f32 %v445_v25, %v438_v9  ;;  %v469_v15 = vadd.f32 %v461_v43, %v450_v10  ;;  %v473_v49 = vadd.f32 %v461_v43, %v454_v14 }
 0x208   :  { %v470_v17 = vadd.f32 %v462_v3, %v451_v36  ;;  %v471_v23 = vadd.f32 %v463_v4, %v452_v13  ;;  %v472_v32 = vadd.f32 %v464_v5, %v453_v31  ;;  %v474_v27 = vadd.f32 %v462_v3, %v455_v37 }
 0x209   :  { %v475_v16 = vadd.f32 %v463_v4, %v456_v44  ;;  %v624_v28 = vrot.slane %v1455_v24, 1  ;;  %v625_v33 = vrot.slane %v1455_v24, 2  ;;  %v476_v50 = vadd.f32 %v464_v5, %v457_v45 }
 0x20a   :  { %v621_v51 = vrot.slane %v608_v22, 1  ;;  %v622_v52 = vrot.slane %v608_v22, 2  ;;  %v1465_v53 = vmax.f32 %v469_v15, 0.0  ;;  %v1467_v34 = vmax.f32 %v470_v17, 0.0 }
 0x20b   :  { %v623_v54 = vrot.slane %v608_v22, 3  ;;  %v1469_v18 = vmax.f32 %v471_v23, 0.0  ;;  %v1471_v55 = vmax.f32 %v472_v32, 0.0  ;;  %v1473_v56 = vmax.f32 %v473_v49, 0.0 }
 0x20c   :  { %v1475_v57 = vmax.f32 %v474_v27, 0.0  ;;  %v1477_v58 = vmax.f32 %v475_v16, 0.0  ;;  %v1479_v29 = vmax.f32 %v476_v50, 0.0  ;;  %v1482_v60 = vmul.f32 %v608_v22, %v1465_v53 }
 0x20d   :  { %v1485_v26 = vmul.f32 %v621_v51, %v1467_v34  ;;  %v1489_v42 = vmul.f32 %v1455_v24, %v1465_v53  ;;  %v1492_v62 = vmul.f32 %v622_v52, %v1469_v18  ;;  %v1495_v39 = vmul.f32 %v623_v54, %v1471_v55 }
 0x20e   :  { %v1498_v43 = vmul.f32 %v624_v28, %v1467_v34  ;;  %v1501_v47 = vmul.f32 %v625_v33, %v1469_v18  ;;  %v1506_v0 = vmul.f32 %v626_v21, %v1471_v55  ;;  %v1509_v48 = vmul.f32 %v608_v22, %v1473_v56 }
 0x20f   :  { %v1512_v25 = vmul.f32 %v621_v51, %v1475_v57  ;;  %v1515_v19 = vmul.f32 %v622_v52, %v1477_v58  ;;  %v1518_v61 = vmul.f32 %v623_v54, %v1479_v29  ;;  %v1522_v1 = vmul.f32 %v1455_v24, %v1473_v56 }
 0x210   :  { %v1525_v2 = vmul.f32 %v624_v28, %v1475_v57  ;;  %v658_v38 = vmul.f32 %v627_v20, %v1467_v34  ;;  %v1529_v3 = vmul.f32 %v625_v33, %v1477_v58  ;;  %v659_v4 = vmul.f32 %v628_v40, %v1469_v18 }
 0x211   :  { %v660_v5 = vmul.f32 %v629_v59, %v1471_v55  ;;  %v674_v6 = vmul.f32 %v627_v20, %v1475_v57  ;;  %v657_v7 = vmul.f32 %v616_v35, %v1465_v53  ;;  %v675_v12 = vmul.f32 %v628_v40, %v1477_v58 }
 0x212   :  { %v676_v8 = vmul.f32 %v629_v59, %v1479_v29  ;;  %v725_v11 = vrot.slane %v658_v38, 7  ;;  %v673_v9 = vmul.f32 %v616_v35, %v1473_v56  ;;  %v727_v10 = vrot.slane %v659_v4, 6 }
 0x213   :  { %v749_v14 = vrot.slane %v674_v6, 7  ;;  %v662_v36 = vmul.f32 %v630_v41, %v1467_v34  ;;  %v729_v31 = vrot.slane %v660_v5, 5  ;;  %v751_v37 = vrot.slane %v675_v12, 6 }
 0x214   :  { %v726_v13 = vsel %vm352_vm3, %v725_v11, %v657_v7  ;;  %v663_v44 = vmul.f32 %v631_v30, %v1469_v18  ;;  %v753_v22 = vrot.slane %v676_v8, 5  ;;  %v664_v17 = vmul.f32 %v632_v63, %v1471_v55 }
 0x215   :  { %v728_v45 = vsel %vm354_vm4, %v727_v10, %v726_v13  ;;  %v750_v15 = vsel %vm352_vm3, %v749_v14, %v673_v9  ;;  %v678_v32 = vmul.f32 %v630_v41, %v1475_v57  ;;  %v679_v49 = vmul.f32 %v631_v30, %v1477_v58 }
 0x216   :  { %v1545_v23 = vsel %vm356_vm5, %v729_v31, %v728_v45  ;;  %v752_v35 = vsel %vm354_vm4, %v751_v37, %v750_v15  ;;  %v661_v16 = vmul.f32 %v620_v46, %v1465_v53  ;;  %v680_v28 = vmul.f32 %v632_v63, %v1479_v29  ;;  %v1609_v45 = vpop.permute.xlu1 %533 }
 0x217   :  { %v754_v27 = vsel %vm356_vm5, %v753_v22, %v752_v35  ;;  %v731_v33 = vrot.slane %v662_v36, 7  ;;  %v672_v50 = vmul.f32 %v626_v21, %v1479_v29  ;;  %v713_v51 = vrot.slane %v1485_v26, 7  ;;  %v1614_v22 = vpop.permute.xlu0 %528 }
 0x218   :  { %v677_v52 = vmul.f32 %v620_v46, %v1473_v56  ;;  %v733_v54 = vrot.slane %v663_v44, 6  ;;  %v735_v40 = vrot.slane %v664_v17, 5  ;;  %v755_v59 = vrot.slane %v678_v32, 7 }
 0x219   :  { %v732_v20 = vsel %vm352_vm3, %v731_v33, %v661_v16  ;;  %v757_v41 = vrot.slane %v679_v49, 6  ;;  %v715_v30 = vrot.slane %v1492_v62, 6  ;;  %v737_v38 = vrot.slane %v1512_v25, 7 }
 0x21a   :  { %v734_v63 = vsel %vm354_vm4, %v733_v54, %v732_v20  ;;  %v499_v4 = vrot.slane %v1475_v57, 7  ;;  %v756_v21 = vsel %vm352_vm3, %v755_v59, %v677_v52  ;;  %v759_v26 = vrot.slane %v680_v28, 5  ;;  %v1617_v16 = vpop.permute.xlu1 %538 }
 0x21b   :  { %v736_v24 = vsel %vm356_vm5, %v735_v40, %v734_v63  ;;  %v501_v46 = vrot.slane %v1477_v58, 6  ;;  %v743_v5 = vrot.slane %v1525_v2, 7  ;;  %v758_v6 = vsel %vm354_vm4, %v757_v41, %v756_v21 }
 0x21c   :  { %v500_v62 = vsel %vm352_vm3, %v499_v4, %v1473_v56  ;;  %v503_v25 = vrot.slane %v1479_v29, 5  ;;  %v739_v7 = vrot.slane %v1515_v19, 6  ;;  %v760_v57 = vsel %vm356_vm5, %v759_v26, %v758_v6 }
 0x21d   :  { %v502_v12 = vsel %vm354_vm4, %v501_v46, %v500_v62  ;;  %v493_v8 = vrot.slane %v1467_v34, 7  ;;  %v719_v11 = vrot.slane %v1498_v43, 7  ;;  %v745_v58 = vrot.slane %v1529_v3, 6 }
 0x21e   :  { %v504_v2 = vsel %vm356_vm5, %v503_v25, %v502_v12  ;;  %v495_v9 = vrot.slane %v1469_v18, 6  ;;  %v721_v56 = vrot.slane %v1501_v47, 6  ;;  %v741_v29 = vrot.slane %v1518_v61, 5  ;;  %v1625_v63 = vpop.permute.xlu1 %845 }
 0x21f   :  { %507 = vrot.lane.b32.xlu1 %v504_v2, %s1172_s29  ;;  %v494_v19 = vsel %vm352_vm3, %v493_v8, %v1465_v53  ;;  %v497_v10 = vrot.slane %v1471_v55, 5  ;;  %v738_v43 = vsel %vm352_vm3, %v737_v38, %v1509_v48  ;;  %v744_v3 = vsel %vm352_vm3, %v743_v5, %v1522_v1 }
 0x220   :  { %v496_v34 = vsel %vm354_vm4, %v495_v9, %v494_v19  ;;  %v714_v18 = vsel %vm352_vm3, %v713_v51, %v1482_v60  ;;  %v717_v47 = vrot.slane %v1495_v39, 5  ;;  %v747_v61 = vrot.slane %v672_v50, 5  ;;  %v1623_v51 = vpop.permute.xlu0 %523 }
 0x221   :  { %v498_v14 = vsel %vm356_vm5, %v497_v10, %v496_v34  ;;  %v740_v53 = vsel %vm354_vm4, %v739_v7, %v738_v43  ;;  %v746_v36 = vsel %vm354_vm4, %v745_v58, %v744_v3  ;;  %v716_v48 = vsel %vm354_vm4, %v715_v30, %v714_v18 }
 0x222   :  { %505 = vrot.lane.b32.xlu0 %v498_v14, %s1172_s29  ;;  %v742_v55 = vsel %vm356_vm5, %v741_v29, %v740_v53  ;;  %v720_v1 = vsel %vm352_vm3, %v719_v11, %v1489_v42  ;;  %v723_v60 = vrot.slane %v1506_v0, 5  ;;  %v748_v39 = vsel %vm356_vm5, %v747_v61, %v746_v36  ;;  %v1629_v11 = vpop.permute.xlu1 %850 }
 0x223   :  { %515 = vrot.lane.b32.xlu1 %v504_v2, %s1173_s30  ;;  %v718_v13 = vsel %vm356_vm5, %v717_v47, %v716_v48  ;;  %v722_v31 = vsel %vm354_vm4, %v721_v56, %v720_v1  ;;  %v811_v44 = vsel %vm101_vm0, %v754_v27, 0.0  ;;  %v783_v42 = vsel %vm101_vm0, %v1545_v23, 0.0 }
 0x224   :  { %v724_v37 = vsel %vm356_vm5, %v723_v60, %v722_v31  ;;  %v812_v0 = vrot.slane %v811_v44, 4  ;;  %v790_v15 = vsel %vm101_vm0, %v736_v24, 0.0  ;;  %v818_v17 = vsel %vm101_vm0, %v760_v57, 0.0  ;;  %v1627_v5 = vpop.permute.xlu0 %840 }
 0x225   :  { %v784_v35 = vrot.slane %v783_v42, 4  ;;  %v791_v32 = vrot.slane %v790_v15, 4  ;;  %v797_v28 = vsel %vm101_vm0, %v742_v55, 0.0  ;;  %v804_v27 = vsel %vm101_vm0, %v748_v39, 0.0 }
 0x226   :  { %513 = vrot.lane.b32.xlu0 %v498_v14, %s1173_s30  ;;  %v813_v49 = vadd.f32 %v812_v0, %v811_v44  ;;  %v819_v33 = vrot.slane %v818_v17, 4  ;;  %v769_v50 = vsel %vm101_vm0, %v718_v13, 0.0  ;;  %v776_v23 = vsel %vm101_vm0, %v724_v37, 0.0 }
 0x227   :  { %v785_v52 = vadd.f32 %v784_v35, %v783_v42  ;;  %v792_v54 = vadd.f32 %v791_v32, %v790_v15  ;;  %v798_v20 = vrot.slane %v797_v28, 4  ;;  %v805_v40 = vrot.slane %v804_v27, 4 }
 0x228   :  { %v814_v59 = vrot.slane %v813_v49, 2  ;;  %v820_v41 = vadd.f32 %v819_v33, %v818_v17  ;;  %v770_v30 = vrot.slane %v769_v50, 4  ;;  %v777_v38 = vrot.slane %v776_v23, 4  ;;  %v1631_v29 = vpop.permute.xlu0 %835 }
 0x229   :  { %v799_v4 = vadd.f32 %v798_v20, %v797_v28  ;;  %v806_v24 = vadd.f32 %v805_v40, %v804_v27  ;;  %v786_v21 = vrot.slane %v785_v52, 2  ;;  %v793_v26 = vrot.slane %v792_v54, 2 }
 0x22a   :  { %v815_v46 = vadd.f32 %v814_v59, %v813_v49  ;;  %v771_v6 = vadd.f32 %v770_v30, %v769_v50  ;;  %v778_v62 = vadd.f32 %v777_v38, %v776_v23  ;;  %v821_v25 = vrot.slane %v820_v41, 2 }
 0x22b   :  { %v800_v7 = vrot.slane %v799_v4, 2  ;;  %v807_v57 = vrot.slane %v806_v24, 2  ;;  %v787_v12 = vadd.f32 %v786_v21, %v785_v52  ;;  %v794_v8 = vadd.f32 %v793_v26, %v792_v54 }
 0x22c   :  { %v816_v58 = vrot.slane %v815_v46, 1  ;;  %v772_v2 = vrot.slane %v771_v6, 2  ;;  %v779_v9 = vrot.slane %v778_v62, 2  ;;  %v822_v56 = vadd.f32 %v821_v25, %v820_v41 }
 0x22d   :  { %v1633_v19 = vadd.f32 %v800_v7, %v799_v4  ;;  %v1635_v10 = vadd.f32 %v807_v57, %v806_v24  ;;  %v788_v34 = vrot.slane %v787_v12, 1  ;;  %v795_v43 = vrot.slane %v794_v8, 1 }
 0x22e   :  { %v1637_v3 = vadd.f32 %v816_v58, %v815_v46  ;;  %v773_v61 = vadd.f32 %v772_v2, %v771_v6  ;;  %v1640_v14 = vadd.f32 %v779_v9, %v778_v62  ;;  %v823_v53 = vrot.slane %v822_v56, 1 }
 0x22f   :  { %v802_v60 = vrot.slane %v1633_v19, 1  ;;  %v809_v39 = vrot.slane %v1635_v10, 1  ;;  %v1648_v13 = vadd.f32 %v788_v34, %v787_v12  ;;  %v1650_v37 = vadd.f32 %v795_v43, %v794_v8 }
 0x230   :  { %v774_v28 = vrot.slane %v773_v61, 1  ;;  %v781_v27 = vrot.slane %v1640_v14, 1  ;;  %v1658_v50 = vadd.f32 %v823_v53, %v822_v56 }
 0x291   :  { %v508_v18 = vpop.permute.xlu1 %507 }
 0x292   :  { %v512_v47 = vsel %vm61_vm1, 0.0, %v508_v18 }
 0x293   :  { %v545_v55 = vmul.f32 %v1623_v51, %v512_v47  ;;  %v546_v36 = vmul.f32 %v1614_v22, %v512_v47  ;;  %v547_v48 = vmul.f32 %v1609_v45, %v512_v47  ;;  %v548_v1 = vmul.f32 %v1617_v16, %v512_v47 }
 0x294   :  { %v506_v31 = vpop.permute.xlu0 %505 }
 0x295   :  { %v577_v44 = vsel %vm101_vm0, %v545_v55, 0.0  ;;  %v584_v42 = vsel %vm101_vm0, %v546_v36, 0.0  ;;  %v591_v0 = vsel %vm101_vm0, %v547_v48, 0.0  ;;  %v598_v15 = vsel %vm101_vm0, %v548_v1, 0.0  ;;  %v516_v25 = vpop.permute.xlu1 %515 }
 0x296   :  { %v578_v17 = vrot.slane %v577_v44, 4  ;;  %v585_v35 = vrot.slane %v584_v42, 4  ;;  %v592_v32 = vrot.slane %v591_v0, 4  ;;  %v599_v49 = vrot.slane %v598_v15, 4 }
 0x297   :  { %v511_v33 = vsel %vm61_vm1, 0.0, %v506_v31  ;;  %v520_v56 = vsel %vm70_vm2, %v516_v25, 0.0  ;;  %v803_v55 = vadd.f32 %v802_v60, %v1633_v19  ;;  %v810_v36 = vadd.f32 %v809_v39, %v1635_v10 }
 0x298   :  { %v579_v23 = vadd.f32 %v578_v17, %v577_v44  ;;  %v586_v52 = vadd.f32 %v585_v35, %v584_v42  ;;  %v593_v54 = vadd.f32 %v592_v32, %v591_v0  ;;  %v600_v20 = vadd.f32 %v599_v49, %v598_v15 }
 0x299   :  { %v541_v40 = vmul.f32 %v1623_v51, %v511_v33  ;;  %v542_v59 = vmul.f32 %v1614_v22, %v511_v33  ;;  %v543_v41 = vmul.f32 %v1609_v45, %v511_v33  ;;  %v544_v30 = vmul.f32 %v1617_v16, %v511_v33 }
 0x29a   :  { %v580_v38 = vrot.slane %v579_v23, 2  ;;  %v587_v4 = vrot.slane %v586_v52, 2  ;;  %v594_v24 = vrot.slane %v593_v54, 2  ;;  %v601_v21 = vrot.slane %v600_v20, 2 }
 0x29b   :  { %v549_v26 = vsel %vm101_vm0, %v541_v40, 0.0  ;;  %v556_v46 = vsel %vm101_vm0, %v542_v59, 0.0  ;;  %v563_v6 = vsel %vm101_vm0, %v543_v41, 0.0  ;;  %v570_v62 = vsel %vm101_vm0, %v544_v30, 0.0  ;;  %v514_v59 = vpop.permute.xlu0 %513 }
 0x29c   :  { %v581_v51 = vadd.f32 %v580_v38, %v579_v23  ;;  %v588_v7 = vadd.f32 %v587_v4, %v586_v52  ;;  %v595_v22 = vadd.f32 %v594_v24, %v593_v54  ;;  %v602_v57 = vadd.f32 %v601_v21, %v600_v20 }
 0x29d   :  { %v550_v45 = vrot.slane %v549_v26, 4  ;;  %v557_v12 = vrot.slane %v556_v46, 4  ;;  %v564_v16 = vrot.slane %v563_v6, 4  ;;  %v571_v8 = vrot.slane %v570_v62, 4 }
 0x29e   :  { %v582_v58 = vrot.slane %v581_v51, 1  ;;  %v589_v2 = vrot.slane %v588_v7, 1  ;;  %v596_v9 = vrot.slane %v595_v22, 1  ;;  %v603_v53 = vrot.slane %v602_v57, 1 }
 0x29f   :  { %v551_v34 = vadd.f32 %v550_v45, %v549_v26  ;;  %v558_v43 = vadd.f32 %v557_v12, %v556_v46  ;;  %v565_v18 = vadd.f32 %v564_v16, %v563_v6  ;;  %v572_v47 = vadd.f32 %v571_v8, %v570_v62 }
 0x2a0   :  { %v1671_v48 = vadd.f32 %v774_v28, %v773_v61  ;;  %v583_v0 = vadd.f32 %v582_v58, %v581_v51  ;;  %v590_v15 = vadd.f32 %v589_v2, %v588_v7  ;;  %v1674_v17 = vadd.f32 %v781_v27, %v1640_v14 }
 0x2a1   :  { %v552_v1 = vrot.slane %v551_v34, 2  ;;  %v559_v31 = vrot.slane %v558_v43, 2  ;;  %v566_v44 = vrot.slane %v565_v18, 2  ;;  %v573_v42 = vrot.slane %v572_v47, 2 }
 0x2a2   :  { %v857_v35 = vmul.f32 %v1631_v29, %v520_v56  ;;  %v597_v32 = vadd.f32 %v596_v9, %v595_v22  ;;  %v858_v19 = vmul.f32 %v1627_v5, %v520_v56  ;;  %v859_v10 = vmul.f32 %v1625_v63, %v520_v56 }
 0x2a3   :  { %v553_v49 = vadd.f32 %v552_v1, %v551_v34  ;;  %v560_v33 = vadd.f32 %v559_v31, %v558_v43  ;;  %v567_v23 = vadd.f32 %v566_v44, %v565_v18  ;;  %v860_v61 = vmul.f32 %v1629_v11, %v520_v56 }
 0x2a4   :  { %v889_v60 = vsel %vm101_vm0, %v857_v35, 0.0  ;;  %v1681_v39 = vadd.f32 %v603_v53, %v602_v57  ;;  %v574_v14 = vadd.f32 %v573_v42, %v572_v47  ;;  %v896_v54 = vsel %vm101_vm0, %v858_v19, 0.0 }
 0x2a5   :  { %v554_v28 = vrot.slane %v553_v49, 1  ;;  %v561_v52 = vrot.slane %v560_v33, 1  ;;  %v890_v27 = vrot.slane %v889_v60, 4  ;;  %v903_v20 = vsel %vm101_vm0, %v859_v10, 0.0 }
 0x2a6   :  { %v910_v40 = vsel %vm101_vm0, %v860_v61, 0.0  ;;  %v829_v41 = vadd.f32 %v803_v55, %v583_v0  ;;  %v830_v30 = vadd.f32 %v810_v36, %v590_v15  ;;  %v831_v38 = vadd.f32 %v1637_v3, %v597_v32 }
 0x2a7   :  { %v568_v4 = vrot.slane %v567_v23, 1  ;;  %v891_v24 = vadd.f32 %v890_v27, %v889_v60  ;;  %v897_v21 = vrot.slane %v896_v54, 4  ;;  %v904_v26 = vrot.slane %v903_v20, 4 }
 0x2a8   :  { %v911_v46 = vrot.slane %v910_v40, 4  ;;  %v1687_v6 = vadd.f32 %v554_v28, %v553_v49  ;;  %v562_v62 = vadd.f32 %v561_v52, %v560_v33  ;;  %v575_v25 = vrot.slane %v574_v14, 1 }
 0x2a9   :  { %v519_v51 = vsel %vm70_vm2, %v514_v59, 0.0  ;;  %v892_v7 = vrot.slane %v891_v24, 2  ;;  %v898_v22 = vadd.f32 %v897_v21, %v896_v54  ;;  %v905_v57 = vadd.f32 %v904_v26, %v903_v20 }
 0x2aa   :  { %v912_v45 = vadd.f32 %v911_v46, %v910_v40  ;;  %v853_v12 = vmul.f32 %v1631_v29, %v519_v51  ;;  %v854_v16 = vmul.f32 %v1627_v5, %v519_v51  ;;  %v855_v3 = vmul.f32 %v1625_v63, %v519_v51 }
 0x2ab   :  { %v856_v8 = vmul.f32 %v1629_v11, %v519_v51  ;;  %v893_v58 = vadd.f32 %v892_v7, %v891_v24  ;;  %v899_v2 = vrot.slane %v898_v22, 2  ;;  %v906_v9 = vrot.slane %v905_v57, 2 }
 0x2ac   :  { %v913_v56 = vrot.slane %v912_v45, 2  ;;  %v861_v34 = vsel %vm101_vm0, %v853_v12, 0.0  ;;  %v868_v43 = vsel %vm101_vm0, %v854_v16, 0.0  ;;  %v875_v18 = vsel %vm101_vm0, %v855_v3, 0.0 }
 0x2ad   :  { %v882_v47 = vsel %vm101_vm0, %v856_v8, 0.0  ;;  %v894_v53 = vrot.slane %v893_v58, 1  ;;  %v900_v29 = vadd.f32 %v899_v2, %v898_v22  ;;  %v907_v55 = vadd.f32 %v906_v9, %v905_v57 }
 0x2ae   :  { %v914_v5 = vadd.f32 %v913_v56, %v912_v45  ;;  %v862_v36 = vrot.slane %v861_v34, 4  ;;  %v869_v63 = vrot.slane %v868_v43, 4  ;;  %v876_v1 = vrot.slane %v875_v18, 4 }
 0x2af   :  { %v883_v11 = vrot.slane %v882_v47, 4  ;;  %v569_v31 = vadd.f32 %v568_v4, %v567_v23  ;;  %v901_v44 = vrot.slane %v900_v29, 1  ;;  %v908_v42 = vrot.slane %v907_v55, 1 }
 0x2b0   :  { %v915_v0 = vrot.slane %v914_v5, 1  ;;  %v863_v15 = vadd.f32 %v862_v36, %v861_v34  ;;  %v870_v35 = vadd.f32 %v869_v63, %v868_v43  ;;  %v877_v32 = vadd.f32 %v876_v1, %v875_v18 }
 0x2b1   :  { %v884_v49 = vadd.f32 %v883_v11, %v882_v47  ;;  %v895_v33 = vadd.f32 %v894_v53, %v893_v58  ;;  %v902_v19 = vadd.f32 %v901_v44, %v900_v29  ;;  %v909_v10 = vadd.f32 %v908_v42, %v907_v55  ;;  %v925_v29 = vld [vmem:[%s1758_s5] sm:$0xf] }
 0x2b2   :  { %v916_v61 = vadd.f32 %v915_v0, %v914_v5  ;;  %v864_v60 = vrot.slane %v863_v15, 2  ;;  %v871_v28 = vrot.slane %v870_v35, 2  ;;  %v878_v52 = vrot.slane %v877_v32, 2 }
 0x2b3   :  { %v885_v27 = vrot.slane %v884_v49, 2  ;;  %v576_v54 = vadd.f32 %v575_v25, %v574_v14  ;;  %v922_v20 = vadd.f32 %v902_v19, %v830_v30  ;;  %v832_v23 = vadd.f32 %v1658_v50, %v1681_v39 }
 0x2b4   :  { %v923_v40 = vadd.f32 %v909_v10, %v831_v38  ;;  %v865_v59 = vadd.f32 %v864_v60, %v863_v15  ;;  %v872_v4 = vadd.f32 %v871_v28, %v870_v35  ;;  %v879_v24 = vadd.f32 %v878_v52, %v877_v32 }
 0x2b5   :  { %v886_v21 = vadd.f32 %v885_v27, %v884_v49  ;;  %v921_v26 = vadd.f32 %v895_v33, %v829_v41  ;;  %v924_v46 = vadd.f32 %v916_v61, %v832_v23  ;;  %v941_v51 = vrot.slane %v922_v20, 7 }
 0x2b6   :  { %v943_v7 = vrot.slane %v923_v40, 6  ;;  %v866_v22 = vrot.slane %v865_v59, 1  ;;  %v873_v57 = vrot.slane %v872_v4, 1  ;;  %v880_v45 = vrot.slane %v879_v24, 1 }
 0x2b7   :  { %v887_v12 = vrot.slane %v886_v21, 1  ;;  %v826_v16 = vadd.f32 %v1674_v17, %v562_v62  ;;  %v827_v14 = vadd.f32 %v1648_v13, %v569_v31  ;;  %v828_v30 = vadd.f32 %v1650_v37, %v576_v54 }
 0x2b8   :  { %v942_v50 = vsel %vm352_vm3, %v941_v51, %v921_v26  ;;  %v867_v39 = vadd.f32 %v866_v22, %v865_v59  ;;  %v874_v38 = vadd.f32 %v873_v57, %v872_v4  ;;  %v881_v25 = vadd.f32 %v880_v45, %v879_v24  ;;  %v926_v45 = vld [vmem:[%s1759_s6] sm:$0xf] }
 0x2b9   :  { %v888_v3 = vadd.f32 %v887_v12, %v886_v21  ;;  %v825_v41 = vadd.f32 %v1671_v48, %v1687_v6  ;;  %v944_v8 = vsel %vm354_vm4, %v943_v7, %v942_v50  ;;  %v945_v56 = vrot.slane %v924_v46, 5 }
 0x2ba   :  { %v918_v58 = vadd.f32 %v874_v38, %v826_v16  ;;  %v919_v2 = vadd.f32 %v881_v25, %v827_v14  ;;  %v1145_v25 = vld [vmem:[%s1753_s0] sm:$0xf] }
 0x2bb   :  { %v920_v9 = vadd.f32 %v888_v3, %v828_v30  ;;  %v917_v17 = vadd.f32 %v867_v39, %v825_v41  ;;  %v946_v37 = vsel %vm356_vm5, %v945_v56, %v944_v8  ;;  %v1063_v3 = vrot.slane %v1145_v25, 1 }
 0x2bc   :  { %v935_v62 = vrot.slane %v918_v58, 7  ;;  %v937_v13 = vrot.slane %v919_v2, 6  ;;  %v950_v47 = vsel %vm101_vm0, %v946_v37, 0.0  ;;  %v1064_v41 = vrot.slane %v1145_v25, 2 }
 0x2bd   :  { %v939_v43 = vrot.slane %v920_v9, 5 }
 0x2be   :  { %v936_v34 = vsel %vm352_vm3, %v935_v62, %v917_v17 }
 0x2bf   :  { %v938_v18 = vsel %vm354_vm4, %v937_v13, %v936_v34 }
 0x2c0   :  { %v940_v48 = vsel %vm356_vm5, %v939_v43, %v938_v18 }
 0x2c1   :  { %v949_v6 = vsel %vm101_vm0, %v940_v48, 0.0 }
 0x2c2   :  { %v951_v53 = vadd.f32 %v950_v47, %v949_v6 }
 0x2c4   :  { %952 = vadd.xlane.f32.xlu0 %v951_v53 }
 0x2da   :  { %1027 = vperm.xlu0 %1139, %v925_v29  }
 0x351   :  { %v953_v55 = vpop.xlane.xlu0 %952 }
 0x352   :  { %v954_v5 = vmul.f32 0.03125, %v953_v55 }
 0x354   :  { %v956_v36 = vrot.slane %v954_v5, 1  ;;  %v957_v63 = vrot.slane %v954_v5, 2  ;;  %v963_v1 = vsub.f32 %v917_v17, %v954_v5  ;;  %v958_v11 = vrot.slane %v954_v5, 3 }
 0x355   :  { %v967_v15 = vsub.f32 %v921_v26, %v954_v5 }
 0x356   :  { %v964_v31 = vsub.f32 %v918_v58, %v956_v36  ;;  %v965_v44 = vsub.f32 %v919_v2, %v957_v63  ;;  %v968_v42 = vsub.f32 %v922_v20, %v956_v36  ;;  %v969_v0 = vsub.f32 %v923_v40, %v957_v63 }
 0x357   :  { %v966_v35 = vsub.f32 %v920_v9, %v958_v11  ;;  %v970_v32 = vsub.f32 %v924_v46, %v958_v11  ;;  %v971_v28 = vmul.f32 %v963_v1, %v963_v1  ;;  %v975_v27 = vmul.f32 %v967_v15, %v967_v15  ;;  %v1146_v9 = vld [vmem:[%s1753_s0 + $0x4] sm:$0xf]  ;;  %s1174_s0 = smov [#allocation2]  }
 0x358   :  { %v972_v49 = vmul.f32 %v964_v31, %v964_v31  ;;  %v973_v33 = vmul.f32 %v965_v44, %v965_v44  ;;  %v976_v19 = vmul.f32 %v968_v42, %v968_v42  ;;  %v977_v10 = vmul.f32 %v969_v0, %v969_v0  ;;  %s1122_s14 = sshll.u32 %s1174_s0, 4  ;;  %s1123_s14 = int_to_ptr.vmem [resolvable:$true] %s1122_s14 }
 0x359   :  { %v974_v61 = vmul.f32 %v966_v35, %v966_v35  ;;  %v978_v60 = vmul.f32 %v970_v32, %v970_v32  ;;  %v1028_v30 = vpop.permute.xlu0 %1027  ;;  %v1065_v2 = vrot.slane %v1145_v25, 3  ;;  %v1066_v56 = vrot.slane %v1146_v9, 1  ;;  %s1147_s15 = scalar_lea.vmem %s1123_s14, 128  ;;  %p1152_p1 = scmp.lt.s32.totalorder %s1123_s14, %s1123_s14 }
 0x35a   :  { %v987_v52 = vrot.slane %v972_v49, 7  ;;  %v989_v54 = vrot.slane %v973_v33, 6  ;;  %v993_v23 = vrot.slane %v976_v19, 7  ;;  %v995_v59 = vrot.slane %v977_v10, 6  ;;  %p1148_p0 = scmp.ne.s32.totalorder %s1123_s14, %s1147_s15  ;;  %p1153_p2 = scmp.lt.s32.totalorder %s1147_s15, %s1147_s15 }
 0x35b   :  { %v991_v24 = vrot.slane %v974_v61, 5  ;;  %v997_v21 = vrot.slane %v978_v60, 5  ;;  %v1029_v50 = vrot.slane %v1028_v30, 1  ;;  %v1030_v39 = vrot.slane %v1028_v30, 2 }
 0x35c   :  { %v988_v4 = vsel %vm352_vm3, %v987_v52, %v971_v28  ;;  %v994_v40 = vsel %vm352_vm3, %v993_v23, %v975_v27  ;;  %v1031_v38 = vrot.slane %v1028_v30, 3  ;;  %v1067_v17 = vrot.slane %v1146_v9, 2  ;;  %p1154_p3 = por %p1153_p2, %p1152_p1 }
 0x35d   :  { %v990_v20 = vsel %vm354_vm4, %v989_v54, %v988_v4  ;;  %v996_v46 = vsel %vm354_vm4, %v995_v59, %v994_v40  ;;  %v1068_v62 = vrot.slane %v1146_v9, 3 }
 0x35e   :  { %v992_v26 = vsel %vm356_vm5, %v991_v24, %v990_v20  ;;  %v998_v51 = vsel %vm356_vm5, %v997_v21, %v996_v46  ;;  %p1155_p4 = pnand %p1154_p3, %p1148_p0 }
 0x35f   :  { %v1001_v7 = vsel %vm101_vm0, %v992_v26, 0.0  ;;  %v1002_v22 = vsel %vm101_vm0, %v998_v51, 0.0 }
 0x360   :  { %v1003_v57 = vadd.f32 %v1002_v22, %v1001_v7 }
 0x362   :  { %1004 = vadd.xlane.f32.xlu1 %v1003_v57 }
 0x373   :  { %1046 = vperm.xlu1 %1140, %v926_v45  }
 0x3ef   :  { %v1005_v12 = vpop.xlane.xlu1 %1004 }
 0x3f0   :  { %v1006_v16 = vmul.f32 0.03125, %v1005_v12 }
 0x3f2   :  { %v1007_v14 = vadd.f32 1e-05, %v1006_v16 }
 0x3f3   :  { %v1047_v8 = vpop.permute.xlu1 %1046 }
 0x3f4   :  { %1143 = vrsqrt.f32 %v1007_v14  ;;  %v1048_v47 = vrot.slane %v1047_v8, 1  ;;  %v1049_v48 = vrot.slane %v1047_v8, 2  ;;  %v1050_v6 = vrot.slane %v1047_v8, 3 }
 0x3fe   :  { %v1144_v58 = vpop.eup %1143 }
 0x3ff   :  { %v1010_v13 = vrot.slane %v1144_v58, 1  ;;  %v1011_v37 = vrot.slane %v1144_v58, 2  ;;  %v1012_v34 = vrot.slane %v1144_v58, 3  ;;  %v1017_v43 = vmul.f32 %v1144_v58, %v963_v1 }
 0x400   :  { %v1021_v18 = vmul.f32 %v1144_v58, %v967_v15 }
 0x401   :  { %v1018_v53 = vmul.f32 %v1010_v13, %v964_v31  ;;  %v1019_v29 = vmul.f32 %v1011_v37, %v965_v44  ;;  %v1020_v55 = vmul.f32 %v1012_v34, %v966_v35  ;;  %v1022_v5 = vmul.f32 %v1010_v13, %v968_v42 }
 0x402   :  { %v1023_v36 = vmul.f32 %v1011_v37, %v969_v0  ;;  %v1024_v63 = vmul.f32 %v1012_v34, %v970_v32  ;;  %v1036_v11 = vmul.f32 %v1028_v30, %v1017_v43  ;;  %v1040_v49 = vmul.f32 %v1028_v30, %v1021_v18 }
 0x403   :  { %v1037_v33 = vmul.f32 %v1029_v50, %v1018_v53  ;;  %v1038_v19 = vmul.f32 %v1030_v39, %v1019_v29  ;;  %v1039_v10 = vmul.f32 %v1031_v38, %v1020_v55  ;;  %v1041_v61 = vmul.f32 %v1029_v50, %v1022_v5 }
 0x404   :  { %v1042_v60 = vmul.f32 %v1030_v39, %v1023_v36  ;;  %v1043_v28 = vmul.f32 %v1031_v38, %v1024_v63  ;;  %v1055_v52 = vadd.f32 %v1047_v8, %v1036_v11  ;;  %v1059_v1 = vadd.f32 %v1047_v8, %v1040_v49 }
 0x405   :  { %v1056_v15 = vadd.f32 %v1048_v47, %v1037_v33  ;;  %v1057_v27 = vadd.f32 %v1049_v48, %v1038_v19  ;;  %v1058_v54 = vadd.f32 %v1050_v6, %v1039_v10  ;;  %v1060_v23 = vadd.f32 %v1048_v47, %v1041_v61 }
 0x406   :  { %v1061_v31 = vadd.f32 %v1049_v48, %v1042_v60  ;;  %v1062_v44 = vadd.f32 %v1050_v6, %v1043_v28  ;;  %v1077_v35 = vadd.f32 %v1145_v25, %v1055_v52  ;;  %v1081_v42 = vadd.f32 %v1146_v9, %v1059_v1 }
 0x407   :  { %v1078_v0 = vadd.f32 %v1063_v3, %v1056_v15  ;;  %v1079_v32 = vadd.f32 %v1064_v41, %v1057_v27  ;;  %v1080_v59 = vadd.f32 %v1065_v2, %v1058_v54  ;;  %v1082_v4 = vadd.f32 %v1066_v56, %v1060_v23 }
 0x408   :  { %v1083_v24 = vadd.f32 %v1067_v17, %v1061_v31  ;;  %v1084_v20 = vadd.f32 %v1068_v62, %v1062_v44  ;;  %v1085_v51 = vmax.f32 %v1077_v35, 0.0  ;;  %v1089_v57 = vmax.f32 %v1081_v42, 0.0 }
 0x409   :  { %v1086_v40 = vmax.f32 %v1078_v0, 0.0  ;;  %v1087_v21 = vmax.f32 %v1079_v32, 0.0  ;;  %v1088_v26 = vmax.f32 %v1080_v59, 0.0  ;;  %v1090_v46 = vmax.f32 %v1082_v4, 0.0 }
 0x40a   :  { %v1091_v7 = vmax.f32 %v1083_v24, 0.0  ;;  %v1092_v22 = vmax.f32 %v1084_v20, 0.0 }
 0x40b   :  { %v1101_v45 = vrot.slane %v1086_v40, 7  ;;  %v1103_v12 = vrot.slane %v1087_v21, 6  ;;  %v1107_v16 = vrot.slane %v1090_v46, 7  ;;  %v1105_v50 = vrot.slane %v1088_v26, 5 }
 0x40c   :  { %v1109_v14 = vrot.slane %v1091_v7, 6  ;;  %v1111_v38 = vrot.slane %v1092_v22, 5 }
 0x40d   :  { %v1102_v30 = vsel %vm352_vm3, %v1101_v45, %v1085_v51  ;;  %v1108_v39 = vsel %vm352_vm3, %v1107_v16, %v1089_v57 }
 0x40e   :  { %v1104_v25 = vsel %vm354_vm4, %v1103_v12, %v1102_v30  ;;  %v1110_v3 = vsel %vm354_vm4, %v1109_v14, %v1108_v39 }
 0x40f   :  { %v1106_v41 = vsel %vm356_vm5, %v1105_v50, %v1104_v25  ;;  %v1112_v8 = vsel %vm356_vm5, %v1111_v38, %v1110_v3 }
 0x410   :  { %1115 = vst.msk [vmem:[#allocation2] sm:$0xf] %vm101_vm0, %v1106_v41  ;;  %1116 = vst.msk [vmem:[#allocation2 + $0x4] sm:$0xf] %vm101_vm0, %v1112_v8 }
 0x411   :  { %1158 = shalt.err (!%p1155_p4)
}
 0x412   :  { %s1159_s17 = scalar_lea.hbm %s1760_s7, 128 }
 0x413   :  { %p1160_p5 = scmp.ne.s32.totalorder %s1760_s7, %s1159_s17  ;;  %p1163_p6 = scmp.lt.u32.totalorder %s1159_s17, %s1760_s7 }
 0x415   :  { %p1165_p7 = pnand %p1163_p6, %p1160_p5 }
 0x417   :  { %1168 = shalt.err (!%p1165_p7)
}
 0x418   :  { %s1175_s22 = smov 64   ;;  %s1176_s23 = smov 4  }
 0x419   :  { %1128 = dma.vmem_to_hbm [thread:$0]  %s1123_s14, 128, %s1760_s7, [#allocation3], %s1175_s22, %s1175_s22, %s1176_s23  }
 0x41a   :  { %1169 = dma.done.wait [#allocation3], 128  }
 0x41b   :  { %1170 = vsyncadd [#allocation3], 4294967168 }
 0x41c   :  { %1132 = vsyncpa [#allocation3], 1 }

</bundles_post_ra>
